<compile_context>
chip_gen: v7x
topology: tpu7x:2x2x1
jax: 0.10.0
libtpu: 0.0.40
codegen_flags: <defaults>
</compile_context>

<pallas_src>
import numpy as np
import jax
import jax.numpy as jnp
from jax.experimental import pallas as pl
from jax.experimental.pallas import tpu as pltpu


# ------------------------------------------------------------------ constants
_TARGET_BLOCK_ELEMS = 512 * 1024   # ~2 MiB per f32 block (VMEM-friendly cap)
_MIN_BLOCK_ELEMS = 64 * 1024       # ~256 KiB f32: amortize ~0.35us/step overhead
_TARGET_GRID_STEPS = 8             # enough steps for pipeline overlap + 2 TCs
_LANE_WIDTHS = (1024, 512, 256, 128)


# --------------------------------------------------------------- module logic
def _precompute(n_bit, quantizer):
    """Mirror of UniformQuantization._precompute: (level, offset, mode)."""
    if quantizer in (0, "mid-rise"):
        level = 1 << n_bit
        return level, float(level // 2), "mid-rise"
    elif quantizer in (1, "mid-tread"):
        level = (1 << n_bit) - 1
        return level, float((level - 1) // 2), "mid-tread"
    raise ValueError(f"quantizer {quantizer} is not supported.")


def _make_quant_kernel(scale, offset, level, mode):
    """Elementwise uniform-quantization kernel (pure VPU, hidden under DMA)."""
    hi = float(level - 1)

    def kernel(x_ref, o_ref):
        # Cast to f32 inside the kernel: input is DMA'd in its native dtype.
        x = x_ref[...].astype(jnp.float32)
        z = x * scale + offset
        if mode == "mid-rise":
            y = jnp.floor(z)
        else:
            # trunc(z + 0.5*sign(z)) == round-half-away-from-zero,
            # expressed with floor/ceil/select (guaranteed Mosaic lowering).
            y = jnp.where(z >= 0.0, jnp.floor(z + 0.5), jnp.ceil(z - 0.5))
        y = jnp.clip(y, 0.0, hi)
        # Emit the final dtype directly (no trailing XLA astype pass).
        o_ref[...] = y.astype(o_ref.dtype)

    return kernel


# ------------------------------------------------------------- layout helpers
def _pick_layout(n):
    """Choose a lane-dense (rows, width) 2D view; pad only if n % 128 != 0."""
    for width in _LANE_WIDTHS:
        if n % width == 0:
            return n // width, width, 0
    # Rare fallback (sizes not divisible by 128): pad to the next 128 multiple.
    n_pad = pl.cdiv(n, 128) * 128
    return n_pad // 128, 128, n_pad - n


def _sublane_multiple(*dtypes):
    """Sublane packing granularity: 8 for 32-bit, 16 for 16-bit, 32 for 8-bit."""
    m = 8
    for dt in dtypes:
        itemsize = np.dtype(dt).itemsize
        m = max(m, 8 * max(1, 4 // itemsize))
    return m


def _pick_block_rows(rows, width, mult):
    """Block rows = clamp(rows/_TARGET_GRID_STEPS, MIN, TARGET) in elements,
    rounded to a legal sublane multiple. Guarantees >=2 grid steps whenever
    possible so the 'parallel' axis can be sharded across both TensorCores."""
    if rows <= mult:
        return rows  # block covers the full sublane extent -> always allowed

    def rnd(r):  # round down to a multiple of `mult`, at least `mult`
        return max(mult, (r // mult) * mult)

    lo = rnd(_MIN_BLOCK_ELEMS // width)       # keep per-step overhead amortized
    hi = rnd(_TARGET_BLOCK_ELEMS // width)    # keep double-buffered VMEM small
    want = rnd(rows // _TARGET_GRID_STEPS)    # aim for ~8 pipelined grid steps
    block = max(lo, min(want, hi))
    if block >= rows and rows >= 2 * mult:
        block = rnd(rows // 2)                # at least 2 steps for megacore
    return min(block, rnd(rows))


# -------------------------------------------------------------------- wrapper
def uniform_quantization(x, abs_max=1.0, n_bit=8, quantizer="mid-rise"):
    """JAX/Pallas equivalent of UniformQuantization.forward."""
    assert abs_max > 0
    assert n_bit >= 1
    level, offset, mode = _precompute(n_bit, quantizer)
    scale = float(level) / (2.0 * float(abs_max))

    orig_shape = x.shape
    orig_dtype = x.dtype
    # Match torch promotion: float input keeps its dtype, integer input -> f32.
    out_dtype = orig_dtype if jnp.issubdtype(orig_dtype, jnp.floating) else jnp.float32

    n = int(np.prod(orig_shape)) if orig_shape else 1
    rows, width, pad = _pick_layout(n)
    if pad:
        # TODO(synk): rare path for sizes not divisible by 128; costs one copy.
        xf = jnp.pad(x.reshape(-1), (0, pad))
    else:
        xf = x.reshape(-1)
    x2d = xf.reshape(rows, width)

    mult = _sublane_multiple(x2d.dtype, out_dtype)
    block_rows = _pick_block_rows(rows, width, mult)
    grid = (pl.cdiv(rows, block_rows),)

    kernel = _make_quant_kernel(scale, offset, level, mode)
    out2d = pl.pallas_call(
        kernel,
        out_shape=jax.ShapeDtypeStruct((rows, width), out_dtype),
        grid=grid,
        in_specs=[pl.BlockSpec((block_rows, width), lambda i: (i, 0))],
        out_specs=pl.BlockSpec((block_rows, width), lambda i: (i, 0)),
        compiler_params=pltpu.CompilerParams(
            dimension_semantics=("parallel",)),
    )(x2d)

    out = out2d.reshape(-1)
    if pad:
        out = out[:n]
    return out.reshape(orig_shape)


# ----------------------------------------------------------------- pure-JAX ref
def _reference(x, abs_max, n_bit, quantizer):
    level, offset, mode = _precompute(n_bit, quantizer)
    z = x.astype(jnp.float32) * (float(level) / (2.0 * float(abs_max))) + offset
    if mode == "mid-rise":
        y = jnp.floor(z)
    else:
        y = jnp.where(z >= 0.0, jnp.floor(z + 0.5), jnp.ceil(z - 0.5))
    return jnp.clip(y, 0.0, float(level - 1))


if __name__ == "__main__":
    key = jax.random.PRNGKey(0)
    # NCHW-style input, values roughly in [-abs_max, abs_max]
    x = jax.random.uniform(key, (2, 4, 16, 16), dtype=jnp.float32,
                           minval=-1.0, maxval=1.0)

    abs_max, n_bit = 1.0, 8

    # f32 input, mid-rise
    y = uniform_quantization(x, abs_max=abs_max, n_bit=n_bit, quantizer="mid-rise")
    y = jax.block_until_ready(y)
    y_ref = _reference(x, abs_max, n_bit, "mid-rise")
    assert y.shape == x.shape and y.dtype == x.dtype
    assert float(jnp.max(jnp.abs(y.astype(jnp.float32) - y_ref))) == 0.0

    # bf16 input: native-dtype read + bf16 writeback (no host casts)
    xb = x.astype(jnp.bfloat16)
    yb = jax.block_until_ready(
        uniform_quantization(xb, abs_max=abs_max, n_bit=n_bit, quantizer="mid-rise"))
    assert yb.dtype == jnp.bfloat16
    yb_ref = _reference(xb, abs_max, n_bit, "mid-rise")
    assert float(jnp.max(jnp.abs(yb.astype(jnp.float32) - yb_ref))) == 0.0

    # Multi-block grid path (rows > sublane multiple -> >= 2 grid steps)
    key2 = jax.random.PRNGKey(0)
    xm = jax.random.uniform(key2, (32, 1024), dtype=jnp.float32,
                            minval=-1.0, maxval=1.0)
    ym = jax.block_until_ready(
        uniform_quantization(xm, abs_max=abs_max, n_bit=n_bit, quantizer="mid-rise"))
    ym_ref = _reference(xm, abs_max, n_bit, "mid-rise")
    assert float(jnp.max(jnp.abs(ym - ym_ref))) == 0.0

    # Docstring example (independent spec check): ramp(-4, 4), abs_max=4, n_bit=2
    ramp = jnp.arange(-4.0, 5.0)
    y2 = jax.block_until_ready(
        uniform_quantization(ramp, abs_max=4, n_bit=2, quantizer="mid-rise"))
    expected = jnp.array([0, 0, 1, 1, 2, 2, 3, 3, 3], dtype=jnp.float32)
    assert jnp.all(y2 == expected)

    # mid-tread path on the same ramp (level=3, offset=1, round half away from 0)
    y3 = jax.block_until_ready(
        uniform_quantization(ramp, abs_max=4, n_bit=2, quantizer="mid-tread"))
    expected3 = jnp.array([0, 0, 0, 1, 1, 1, 2, 2, 2], dtype=jnp.float32)
    assert jnp.all(y3 == expected3)

    # Integer input promotes to float32 output (torch int*float promotion)
    ri = jnp.arange(-4, 5, dtype=jnp.int32)
    y4 = jax.block_until_ready(
        uniform_quantization(ri, abs_max=4, n_bit=2, quantizer="mid-rise"))
    assert y4.dtype == jnp.float32 and jnp.all(y4 == expected)

    print("KERNEL_OK")
</pallas_src>

<mosaic_0001>
module attributes {stable_mosaic.version = 11 : i64} {
  func.func @kernel(%arg0: i32, %arg1: memref<2x1024xf32, #tpu.memory_space<vmem>>, %arg2: memref<2x1024xf32, #tpu.memory_space<vmem>>) attributes {dimension_semantics = [#tpu.dimension_semantics<parallel>], iteration_bounds = array<i64: 1>, scalar_prefetch = 0 : i64, scratch_operands = 0 : i64, tpu.core_type = #tpu.core_type<tc>, window_params = [{transform_indices = @transform_0, window_bounds = array<i64: 2, 1024>}, {transform_indices = @transform_1, window_bounds = array<i64: 2, 1024>}]} {
    %c0 = arith.constant 0 : index
    %c0_0 = arith.constant 0 : index
    %0 = vector.load %arg1[%c0, %c0_0] : memref<2x1024xf32, #tpu.memory_space<vmem>>, vector<2x1024xf32>
    %cst = arith.constant 1.280000e+02 : f32
    %1 = vector.broadcast %cst : f32 to vector<2x1024xf32>
    %2 = arith.mulf %0, %1 : vector<2x1024xf32>
    %cst_1 = arith.constant 1.280000e+02 : f32
    %3 = vector.broadcast %cst_1 : f32 to vector<2x1024xf32>
    %4 = arith.addf %2, %3 : vector<2x1024xf32>
    %5 = math.floor %4 : vector<2x1024xf32>
    %cst_2 = arith.constant 0.000000e+00 : f32
    %cst_3 = arith.constant 2.550000e+02 : f32
    %6 = vector.broadcast %cst_2 : f32 to vector<2x1024xf32>
    %7 = arith.maximumf %6, %5 : vector<2x1024xf32>
    %8 = vector.broadcast %cst_3 : f32 to vector<2x1024xf32>
    %9 = arith.minimumf %8, %7 : vector<2x1024xf32>
    %c0_4 = arith.constant 0 : index
    %c0_5 = arith.constant 0 : index
    %10 = vector.load %arg2[%c0_4, %c0_5] : memref<2x1024xf32, #tpu.memory_space<vmem>>, vector<2x1024xf32>
    tpu.vector_store %arg2[%c0_4, %c0_5], %9 {strides = array<i32>} : memref<2x1024xf32, #tpu.memory_space<vmem>>, vector<2x1024xf32>,
    return
  }
  func.func @transform_0(%arg0: i32) -> (i32, i32) {
    %c0_i32 = arith.constant 0 : i32
    %c0_i32_0 = arith.constant 0 : i32
    return %arg0, %c0_i32 : i32, i32
  }
  func.func @transform_1(%arg0: i32) -> (i32, i32) {
    %c0_i32 = arith.constant 0 : i32
    %c0_i32_0 = arith.constant 0 : i32
    return %arg0, %c0_i32 : i32, i32
  }
}

</mosaic_0001>

<bundles_post_ra>
// kernel: tpu_custom_call.1
= control target key start
LH: loop header
LB: loop body
LE: loop exit
PB: predicated region body
PF: predicated region fallthrough
CT: control target
= control target key end

     0   :  { %6 = vsyncpa [#allocation3], 0  ;;  %s136_s0 = inlined_call_operand.hbm [shape: f32[2,1024], index: 0, kind: input, shape index: {}]   ;;  %s137_s1 = inlined_call_operand.hbm [shape: f32[2,1024], index: 1, kind: output, shape index: {}]  }
   0x1   :  { %7 = vsyncpa [#allocation4], 0  ;;  %s100_s6 = smov [#allocation2]   ;;  %s52_s10 = scalar_lea.hbm %s136_s0, 256 }
   0x2   :  { %s14_s7 = sshll.u32 %s100_s6, 4  ;;  %p53_p0 = scmp.ne.s32.totalorder %s136_s0, %s52_s10  ;;  %s15_s7 = int_to_ptr.vmem [resolvable:$true] %s14_s7 }
   0x3   :  { %p56_p1 = scmp.lt.u32.totalorder %s52_s10, %s136_s0 }
   0x5   :  { %p58_p2 = pnand %p56_p1, %p53_p0 }
   0x7   :  { %61 = shalt.err (!%p58_p2)
}
   0x8   :  { %s62_s15 = scalar_lea.vmem %s15_s7, 256  ;;  %p67_p4 = scmp.lt.s32.totalorder %s15_s7, %s15_s7 }
   0x9   :  { %p63_p3 = scmp.ne.s32.totalorder %s15_s7, %s62_s15  ;;  %p68_p5 = scmp.lt.s32.totalorder %s62_s15, %s62_s15 }
   0xb   :  { %p69_p6 = por %p68_p5, %p67_p4 }
   0xd   :  { %p70_p7 = pnand %p69_p6, %p63_p3 }
   0xf   :  { %73 = shalt.err (!%p70_p7)
}
  0x10   :  { %17 = dma.hbm_to_vmem [thread:$0]  %s136_s0, 256, %s15_s7, [#allocation3]  }
  0x11   :  { %96 = dma.done.wait [#allocation3], 256  }
  0x12   :  { %97 = vsyncadd [#allocation3], 4294967040  ;;  %v21_v0 = vld [vmem:[#allocation2] sm:$0xff]  ;;  %v22_v1 = vld [vmem:[#allocation2 + $0x8] sm:$0xff]  ;;  %s101_s18 = smov [#allocation5]  }
  0x13   :  { %v23_v2 = vmul.f32 128.0, %v21_v0  ;;  %v24_v3 = vmul.f32 128.0, %v22_v1  ;;  %s41_s19 = sshll.u32 %s101_s18, 4  ;;  %s42_s19 = int_to_ptr.vmem [resolvable:$true] %s41_s19 }
  0x14   :  { %s74_s0 = scalar_lea.vmem %s42_s19, 256  ;;  %p79_p9 = scmp.lt.s32.totalorder %s42_s19, %s42_s19 }
  0x15   :  { %v25_v4 = vadd.f32 128.0, %v23_v2  ;;  %v26_v5 = vadd.f32 128.0, %v24_v3  ;;  %p75_p8 = scmp.ne.s32.totalorder %s42_s19, %s74_s0  ;;  %p80_p10 = scmp.lt.s32.totalorder %s74_s0, %s74_s0 }
  0x17   :  { %v27_v6 = vfloor.f32 %v25_v4  ;;  %v28_v7 = vfloor.f32 %v26_v5  ;;  %p81_p11 = por %p80_p10, %p79_p9 }
  0x19   :  { %v29_v8 = vmax.f32 %v27_v6, 0.0  ;;  %v30_v9 = vmax.f32 %v28_v7, 0.0  ;;  %p82_p12 = pnand %p81_p11, %p75_p8 }
  0x1b   :  { %v31_v10 = vmin.f32 %v29_v8, 255.0  ;;  %v32_v11 = vmin.f32 %v30_v9, 255.0 }
  0x1d   :  { %33 = vst [vmem:[#allocation5] sm:$0xff] %v31_v10  ;;  %34 = vst [vmem:[#allocation5 + $0x8] sm:$0xff] %v32_v11 }
  0x1e   :  { %85 = shalt.err (!%p82_p12)
}
  0x1f   :  { %s86_s22 = scalar_lea.hbm %s137_s1, 256 }
  0x20   :  { %p87_p13 = scmp.ne.s32.totalorder %s137_s1, %s86_s22  ;;  %p90_p0 = scmp.lt.u32.totalorder %s86_s22, %s137_s1 }
  0x22   :  { %p92_p1 = pnand %p90_p0, %p87_p13 }
  0x24   :  { %95 = shalt.err (!%p92_p1)
}
  0x25   :  { %44 = dma.vmem_to_hbm [thread:$0]  %s42_s19, 256, %s137_s1, [#allocation4]  }
  0x26   :  { %98 = dma.done.wait [#allocation4], 256  }
  0x27   :  { %99 = vsyncadd [#allocation4], 4294967040 }
  0x28   :  { %48 = vsyncpa [#allocation3], 1 }
  0x29   :  { %49 = vsyncpa [#allocation4], 1 }

</bundles_post_ra>
